<compile_context>
chip_gen: v5e
topology: v5e:2x2
jax: 0.10.0
libtpu: 0.0.40
codegen_flags: <defaults>
</compile_context>

<pallas_src>
import functools

import jax
import jax.numpy as jnp
from jax.experimental import pallas as pl
from jax.experimental.pallas import tpu as pltpu


HIDDEN_DIM = 256


def _round_up(x, m):
    return (x + m - 1) // m * m


def actor_kernel(max_action,
                 s_ref, w1_ref, b1_ref, w2_ref, b2_ref, w3_ref, b3_ref,
                 out_ref):
    cdt = w1_ref.dtype  # compute (matmul-input) dtype: bf16 or f32

    # Hidden layer 1: relu(state @ W1 + b1)  -- MXU matmul, f32 accumulate.
    a = jnp.dot(s_ref[...], w1_ref[...], preferred_element_type=jnp.float32)
    a = jnp.maximum(a + b1_ref[...], 0.0)

    # Hidden layer 2: relu(a @ W2 + b2)
    a = jnp.dot(a.astype(cdt), w2_ref[...], preferred_element_type=jnp.float32)
    a = jnp.maximum(a + b2_ref[...], 0.0)

    # Fused heads: one lane-dense matmul covers [W3_1 | W3_2 | zero-pad].
    h = jnp.dot(a.astype(cdt), w3_ref[...], preferred_element_type=jnp.float32)
    out_ref[...] = (max_action * jnp.tanh(h + b3_ref[...])).astype(out_ref.dtype)


@functools.partial(jax.jit,
                   static_argnames=("max_action", "compute_dtype", "block_batch"))
def actor_forward(state, params, max_action, *,
                  compute_dtype=jnp.bfloat16, block_batch=512):
    """Full Actor forward in one batch-tiled Pallas kernel.

    Returns (discrete_action, parameter_action) with the original (B, D)/(B, P)
    shapes; internally the two heads are fused into one 128-lane-padded output.
    """
    w1, b1, w2, b2, w31, b31, w32, b32 = params
    B, S = state.shape
    H = w1.shape[1]
    D = w31.shape[1]
    P = w32.shape[1]

    # --- Fuse + lane-pad the two heads (zero pad -> tanh(0)=0, sliced off). ---
    OUT = _round_up(D + P, 128)
    w3 = jnp.zeros((H, OUT), jnp.float32)
    w3 = w3.at[:, :D].set(w31).at[:, D:D + P].set(w32)
    b3 = jnp.zeros((1, OUT), jnp.float32)
    b3 = b3.at[:, :D].set(b31).at[:, D:D + P].set(b32)

    # --- dtype split: matmul inputs in compute_dtype, epilogue stays f32. ---
    cdt = jnp.dtype(compute_dtype)
    w1c, w2c, w3c = (w.astype(cdt) for w in (w1, w2, w3))
    b1f, b2f, b3f = (b.astype(jnp.float32) for b in (b1, b2, b3))

    # --- Batch tiling (pad rows so every tile is full and 8-aligned). ---
    TB = min(block_batch, _round_up(B, 8))
    B_pad = _round_up(B, TB)
    state_c = state.astype(cdt)
    if B_pad != B:
        state_c = jnp.pad(state_c, ((0, B_pad - B), (0, 0)))
    grid = (B_pad // TB,)

    batch_map = lambda i: (i, 0)
    const_map = lambda i: (0, 0)

    # Advisory cost estimate for XLA's scheduler.
    flops = 2 * B_pad * (S * H + H * H + H * OUT)
    bytes_accessed = (
        state_c.size * state_c.dtype.itemsize
        + sum(x.size * x.dtype.itemsize for x in (w1c, b1f, w2c, b2f, w3c, b3f))
        + B_pad * OUT * 4)
    cost = pl.CostEstimate(flops=flops,
                           transcendentals=B_pad * OUT,
                           bytes_accessed=bytes_accessed)

    kernel = functools.partial(actor_kernel, float(max_action))
    out = pl.pallas_call(
        kernel,
        out_shape=jax.ShapeDtypeStruct((B_pad, OUT), jnp.float32),
        grid=grid,
        in_specs=[
            pl.BlockSpec((TB, S), batch_map),      # state tile
            pl.BlockSpec((S, H), const_map),       # W1 (VMEM-resident)
            pl.BlockSpec((1, H), const_map),       # b1
            pl.BlockSpec((H, H), const_map),       # W2
            pl.BlockSpec((1, H), const_map),       # b2
            pl.BlockSpec((H, OUT), const_map),     # fused heads [W3_1|W3_2|pad]
            pl.BlockSpec((1, OUT), const_map),     # fused bias
        ],
        out_specs=pl.BlockSpec((TB, OUT), batch_map),
        compiler_params=pltpu.CompilerParams(
            dimension_semantics=("parallel",)),    # shard batch across TCs (v7x)
        cost_estimate=cost,
    )(state_c, w1c, b1f, w2c, b2f, w3c, b3f)

    discrete_action = out[:B, :D]
    parameter_action = out[:B, D:D + P]
    return discrete_action, parameter_action


def init_actor_params(key, state_dim, discrete_action_dim, parameter_action_dim,
                      hidden_dim=HIDDEN_DIM):
    """Deterministic synthetic init (PyTorch-Linear style uniform bounds)."""
    keys = jax.random.split(key, 8)

    def linear(kw, kb, fan_in, fan_out):
        bound = 1.0 / jnp.sqrt(fan_in)
        # stored transposed: (in, out) so kernel does x @ W
        w = jax.random.uniform(kw, (fan_in, fan_out), jnp.float32, -bound, bound)
        b = jax.random.uniform(kb, (1, fan_out), jnp.float32, -bound, bound)
        return w, b

    w1, b1 = linear(keys[0], keys[1], state_dim, hidden_dim)
    w2, b2 = linear(keys[2], keys[3], hidden_dim, hidden_dim)
    w31, b31 = linear(keys[4], keys[5], hidden_dim, discrete_action_dim)
    w32, b32 = linear(keys[6], keys[7], hidden_dim, parameter_action_dim)
    # NOTE: the PyTorch module also defines self.l3, but forward() never uses
    # it, so it is deliberately not instantiated here.
    return (w1, b1, w2, b2, w31, b31, w32, b32)


def actor_forward_ref(state, params, max_action):
    """Pure-JAX f32 reference for correctness checking."""
    w1, b1, w2, b2, w31, b31, w32, b32 = params
    a = jax.nn.relu(state @ w1 + b1)
    a = jax.nn.relu(a @ w2 + b2)
    da = max_action * jnp.tanh(a @ w31 + b31)
    pa = max_action * jnp.tanh(a @ w32 + b32)
    return da, pa


if __name__ == "__main__":
    state_dim = 16
    discrete_action_dim = 4
    parameter_action_dim = 6
    max_action = 1.0

    key = jax.random.PRNGKey(0)
    k_state, k_params, k_state2 = jax.random.split(key, 3)
    params = init_actor_params(k_params, state_dim, discrete_action_dim,
                               parameter_action_dim)

    # --- Check 1: small batch, f32 compute path (tight tolerance). ---
    batch = 8
    state = jax.random.normal(k_state, (batch, state_dim), jnp.float32)
    da, pa = actor_forward(state, params, max_action, compute_dtype=jnp.float32)
    da = jax.block_until_ready(da)
    pa = jax.block_until_ready(pa)
    da_ref, pa_ref = actor_forward_ref(state, params, max_action)
    assert da.shape == (batch, discrete_action_dim)
    assert pa.shape == (batch, parameter_action_dim)
    assert jnp.allclose(da, da_ref, atol=1e-5, rtol=1e-5)
    assert jnp.allclose(pa, pa_ref, atol=1e-5, rtol=1e-5)

    # --- Check 2: non-multiple-of-8 batch, default bf16 matmul inputs. ---
    batch2 = 37  # exercises row padding + output slicing
    state2 = jax.random.normal(k_state2, (batch2, state_dim), jnp.float32)
    da2, pa2 = actor_forward(state2, params, max_action)  # bf16 weights/inputs
    da2 = jax.block_until_ready(da2)
    pa2 = jax.block_until_ready(pa2)
    da2_ref, pa2_ref = actor_forward_ref(state2, params, max_action)
    assert da2.shape == (batch2, discrete_action_dim)
    assert pa2.shape == (batch2, parameter_action_dim)
    assert jnp.allclose(da2, da2_ref, atol=3e-2, rtol=3e-2)
    assert jnp.allclose(pa2, pa2_ref, atol=3e-2, rtol=3e-2)

    print("KERNEL_OK")
</pallas_src>

<mosaic_0001>
module attributes {stable_mosaic.version = 11 : i64} {
  func.func @actor_kernel(%arg0: i32, %arg1: memref<8x16xf32, #tpu.memory_space<vmem>>, %arg2: memref<16x256xf32, #tpu.memory_space<vmem>>, %arg3: memref<1x256xf32, #tpu.memory_space<vmem>>, %arg4: memref<256x256xf32, #tpu.memory_space<vmem>>, %arg5: memref<1x256xf32, #tpu.memory_space<vmem>>, %arg6: memref<256x128xf32, #tpu.memory_space<vmem>>, %arg7: memref<1x128xf32, #tpu.memory_space<vmem>>, %arg8: memref<8x128xf32, #tpu.memory_space<vmem>>) attributes {dimension_semantics = [#tpu.dimension_semantics<parallel>], iteration_bounds = array<i64: 1>, scalar_prefetch = 0 : i64, scratch_operands = 0 : i64, tpu.core_type = #tpu.core_type<tc>, window_params = [{transform_indices = @transform_0, window_bounds = array<i64: 8, 16>}, {pipeline_mode = #tpu.pipeline_mode<synchronous>, transform_indices = @transform_1, window_bounds = array<i64: 16, 256>}, {pipeline_mode = #tpu.pipeline_mode<synchronous>, transform_indices = @transform_2, window_bounds = array<i64: 1, 256>}, {pipeline_mode = #tpu.pipeline_mode<synchronous>, transform_indices = @transform_3, window_bounds = array<i64: 256, 256>}, {pipeline_mode = #tpu.pipeline_mode<synchronous>, transform_indices = @transform_4, window_bounds = array<i64: 1, 256>}, {pipeline_mode = #tpu.pipeline_mode<synchronous>, transform_indices = @transform_5, window_bounds = array<i64: 256, 128>}, {pipeline_mode = #tpu.pipeline_mode<synchronous>, transform_indices = @transform_6, window_bounds = array<i64: 1, 128>}, {transform_indices = @transform_7, window_bounds = array<i64: 8, 128>}]} {
    %c0 = arith.constant 0 : index
    %c0_0 = arith.constant 0 : index
    %0 = vector.load %arg1[%c0, %c0_0] : memref<8x16xf32, #tpu.memory_space<vmem>>, vector<8x16xf32>
    %c0_1 = arith.constant 0 : index
    %c0_2 = arith.constant 0 : index
    %1 = vector.load %arg2[%c0_1, %c0_2] : memref<16x256xf32, #tpu.memory_space<vmem>>, vector<16x256xf32>
    %cst = arith.constant dense<0.000000e+00> : vector<8x256xf32>
    %2 = tpu.matmul %0, %1, %cst {dimension_numbers = #tpu.dot_dimension_numbers<[1], [0], [0], [1], [0, 0, 1, 1], [], []>} : vector<8x16xf32>, vector<16x256xf32>, vector<8x256xf32> -> vector<8x256xf32>
    %c0_3 = arith.constant 0 : index
    %c0_4 = arith.constant 0 : index
    %3 = vector.load %arg3[%c0_3, %c0_4] : memref<1x256xf32, #tpu.memory_space<vmem>>, vector<1x256xf32>
    %4 = vector.broadcast %3 : vector<1x256xf32> to vector<8x256xf32>
    %5 = arith.addf %2, %4 : vector<8x256xf32>
    %cst_5 = arith.constant 0.000000e+00 : f32
    %6 = vector.broadcast %cst_5 : f32 to vector<8x256xf32>
    %7 = arith.maximumf %5, %6 : vector<8x256xf32>
    %c0_6 = arith.constant 0 : index
    %c0_7 = arith.constant 0 : index
    %8 = vector.load %arg4[%c0_6, %c0_7] : memref<256x256xf32, #tpu.memory_space<vmem>>, vector<256x256xf32>
    %cst_8 = arith.constant dense<0.000000e+00> : vector<8x256xf32>
    %9 = tpu.matmul %7, %8, %cst_8 {dimension_numbers = #tpu.dot_dimension_numbers<[1], [0], [0], [1], [0, 0, 1, 1], [], []>} : vector<8x256xf32>, vector<256x256xf32>, vector<8x256xf32> -> vector<8x256xf32>
    %c0_9 = arith.constant 0 : index
    %c0_10 = arith.constant 0 : index
    %10 = vector.load %arg5[%c0_9, %c0_10] : memref<1x256xf32, #tpu.memory_space<vmem>>, vector<1x256xf32>
    %11 = vector.broadcast %10 : vector<1x256xf32> to vector<8x256xf32>
    %12 = arith.addf %9, %11 : vector<8x256xf32>
    %cst_11 = arith.constant 0.000000e+00 : f32
    %13 = vector.broadcast %cst_11 : f32 to vector<8x256xf32>
    %14 = arith.maximumf %12, %13 : vector<8x256xf32>
    %c0_12 = arith.constant 0 : index
    %c0_13 = arith.constant 0 : index
    %15 = vector.load %arg6[%c0_12, %c0_13] : memref<256x128xf32, #tpu.memory_space<vmem>>, vector<256x128xf32>
    %cst_14 = arith.constant dense<0.000000e+00> : vector<8x128xf32>
    %16 = tpu.matmul %14, %15, %cst_14 {dimension_numbers = #tpu.dot_dimension_numbers<[1], [0], [0], [1], [0, 0, 1, 1], [], []>} : vector<8x256xf32>, vector<256x128xf32>, vector<8x128xf32> -> vector<8x128xf32>
    %c0_15 = arith.constant 0 : index
    %c0_16 = arith.constant 0 : index
    %17 = vector.load %arg7[%c0_15, %c0_16] : memref<1x128xf32, #tpu.memory_space<vmem>>, vector<1x128xf32>
    %18 = vector.broadcast %17 : vector<1x128xf32> to vector<8x128xf32>
    %19 = arith.addf %16, %18 : vector<8x128xf32>
    %20 = math.tanh %19 : vector<8x128xf32>
    %cst_17 = arith.constant 1.000000e+00 : f32
    %21 = vector.broadcast %cst_17 : f32 to vector<8x128xf32>
    %22 = arith.mulf %21, %20 : vector<8x128xf32>
    %c0_18 = arith.constant 0 : index
    %c0_19 = arith.constant 0 : index
    %23 = vector.load %arg8[%c0_18, %c0_19] : memref<8x128xf32, #tpu.memory_space<vmem>>, vector<8x128xf32>
    tpu.vector_store %arg8[%c0_18, %c0_19], %22 {strides = array<i32>} : memref<8x128xf32, #tpu.memory_space<vmem>>, vector<8x128xf32>,
    return
  }
  func.func @transform_0(%arg0: i32) -> (i32, i32) {
    %c0_i32 = arith.constant 0 : i32
    %c0_i32_0 = arith.constant 0 : i32
    return %arg0, %c0_i32 : i32, i32
  }
  func.func @transform_1(%arg0: i32) -> (i32, i32) {
    %c0_i32 = arith.constant 0 : i32
    %c0_i32_0 = arith.constant 0 : i32
    %c0_i32_1 = arith.constant 0 : i32
    return %c0_i32, %c0_i32_0 : i32, i32
  }
  func.func @transform_2(%arg0: i32) -> (i32, i32) {
    %c0_i32 = arith.constant 0 : i32
    %c0_i32_0 = arith.constant 0 : i32
    %c0_i32_1 = arith.constant 0 : i32
    return %c0_i32, %c0_i32_0 : i32, i32
  }
  func.func @transform_3(%arg0: i32) -> (i32, i32) {
    %c0_i32 = arith.constant 0 : i32
    %c0_i32_0 = arith.constant 0 : i32
    %c0_i32_1 = arith.constant 0 : i32
    return %c0_i32, %c0_i32_0 : i32, i32
  }
  func.func @transform_4(%arg0: i32) -> (i32, i32) {
    %c0_i32 = arith.constant 0 : i32
    %c0_i32_0 = arith.constant 0 : i32
    %c0_i32_1 = arith.constant 0 : i32
    return %c0_i32, %c0_i32_0 : i32, i32
  }
  func.func @transform_5(%arg0: i32) -> (i32, i32) {
    %c0_i32 = arith.constant 0 : i32
    %c0_i32_0 = arith.constant 0 : i32
    %c0_i32_1 = arith.constant 0 : i32
    return %c0_i32, %c0_i32_0 : i32, i32
  }
  func.func @transform_6(%arg0: i32) -> (i32, i32) {
    %c0_i32 = arith.constant 0 : i32
    %c0_i32_0 = arith.constant 0 : i32
    %c0_i32_1 = arith.constant 0 : i32
    return %c0_i32, %c0_i32_0 : i32, i32
  }
  func.func @transform_7(%arg0: i32) -> (i32, i32) {
    %c0_i32 = arith.constant 0 : i32
    %c0_i32_0 = arith.constant 0 : i32
    return %arg0, %c0_i32 : i32, i32
  }
}

</mosaic_0001>

<bundles_post_ra>
// kernel: actor_forward.1
= control target key start
LH: loop header
LB: loop body
LE: loop exit
PB: predicated region body
PF: predicated region fallthrough
CT: control target
= control target key end

     0   :  { %vm37_vm0 = vcmask 130048   ;;  %s677_s1 = inlined_call_operand.vmem [shape: f32[16,256], index: 1, kind: input, shape index: {}]   ;;  %s678_s0 = inlined_call_operand.vmem [shape: f32[8,16], index: 0, kind: input, shape index: {}]   ;;  %s679_s3 = inlined_call_operand.vmem [shape: f32[256,256], index: 3, kind: input, shape index: {}]   ;;  %s680_s5 = inlined_call_operand.vmem [shape: f32[256,128], index: 5, kind: input, shape index: {}]   ;;  %s681_s2 = inlined_call_operand.vmem [shape: f32[1,256], index: 2, kind: input, shape index: {}]   ;;  %s682_s4 = inlined_call_operand.vmem [shape: f32[1,256], index: 4, kind: input, shape index: {}]   ;;  %s683_s6 = inlined_call_operand.vmem [shape: f32[1,128], index: 6, kind: input, shape index: {}]   ;;  %s684_s7 = inlined_call_operand.vmem [shape: f32[8,128], index: 7, kind: output, shape index: {}]  }
   0x1   :  { %v29_v0 = vld [vmem:[%s677_s1 + $0x10] sm:$0xff]  ;;  %v27_v1 = vld [vmem:[%s677_s1] sm:$0xff]  ;;  %v30_v2 = vld [vmem:[%s677_s1 + $0x18] sm:$0xff] }
   0x2   :  { %55 = vmatpush.msra.mxu0 %v29_v0  ;;  %75 = vmatpush.msra.mxu1 %v30_v2  ;;  %v26_v3 = vld [vmem:[%s678_s0] sm:$0xff]  ;;  %v28_v4 = vld [vmem:[%s677_s1 + $0x8] sm:$0xff]  ;;  %v113_v5 = vld [vmem:[%s679_s3 + $0xf0] sm:$0xff] }
   0x3   :  { %153 = vmatpush.msra.mxu2 %v113_v5  ;;  %v114_v6 = vld [vmem:[%s679_s3 + $0xf8] sm:$0xff]  ;;  %v111_v7 = vld [vmem:[%s679_s3 + $0xe0] sm:$0xff]  ;;  %v145_v8 = vld [vmem:[%s679_s3 + $0x1f0] sm:$0xff] }
   0x4   :  { %56 = vmatpush.msra.mxu0 %v27_v1  ;;  %76 = vmatpush.msra.mxu1 %v28_v4  ;;  %v146_v9 = vld [vmem:[%s679_s3 + $0x1f8] sm:$0xff]  ;;  %v112_v10 = vld [vmem:[%s679_s3 + $0xe8] sm:$0xff]  ;;  %v109_v11 = vld [vmem:[%s679_s3 + $0xd0] sm:$0xff] }
   0x5   :  { %317 = vmatmul.msk.f32.vlgmr.msra.gmra.mxu0 %vm37_vm0, %v26_v3  ;;  %318 = vmatmul.msk.f32.vlgmr.msra.gmra.mxu1 %vm37_vm0, %v26_v3  ;;  %v143_v12 = vld [vmem:[%s679_s3 + $0x1e0] sm:$0xff]  ;;  %v144_v13 = vld [vmem:[%s679_s3 + $0x1e8] sm:$0xff]  ;;  %v110_v14 = vld [vmem:[%s679_s3 + $0xd8] sm:$0xff] }
   0x6   :  { %193 = vmatpush.msrb.mxu0 %v114_v6  ;;  %154 = vmatpush.msra.mxu2 %v111_v7  ;;  %v107_v15 = vld [vmem:[%s679_s3 + $0xc0] sm:$0xff]  ;;  %v141_v16 = vld [vmem:[%s679_s3 + $0x1d0] sm:$0xff]  ;;  %v142_v17 = vld [vmem:[%s679_s3 + $0x1d8] sm:$0xff] }
   0x7   :  { %173 = vmatpush.msra.mxu3 %v145_v8  ;;  %213 = vmatpush.msrb.mxu1 %v146_v9  ;;  %v108_v18 = vld [vmem:[%s679_s3 + $0xc8] sm:$0xff]  ;;  %v105_v19 = vld [vmem:[%s679_s3 + $0xb0] sm:$0xff]  ;;  %v139_v20 = vld [vmem:[%s679_s3 + $0x1c0] sm:$0xff] }
   0x8   :  { %194 = vmatpush.msrb.mxu0 %v112_v10  ;;  %155 = vmatpush.msra.mxu2 %v109_v11  ;;  %v140_v21 = vld [vmem:[%s679_s3 + $0x1c8] sm:$0xff]  ;;  %v106_v22 = vld [vmem:[%s679_s3 + $0xb8] sm:$0xff]  ;;  %v103_v23 = vld [vmem:[%s679_s3 + $0xa0] sm:$0xff] }
   0x9   :  { %174 = vmatpush.msra.mxu3 %v143_v12  ;;  %214 = vmatpush.msrb.mxu1 %v144_v13  ;;  %v137_v24 = vld [vmem:[%s679_s3 + $0x1b0] sm:$0xff]  ;;  %v138_v25 = vld [vmem:[%s679_s3 + $0x1b8] sm:$0xff]  ;;  %v104_v26 = vld [vmem:[%s679_s3 + $0xa8] sm:$0xff] }
   0xa   :  { %195 = vmatpush.msrb.mxu0 %v110_v14  ;;  %156 = vmatpush.msra.mxu2 %v107_v15  ;;  %v101_v27 = vld [vmem:[%s679_s3 + $0x90] sm:$0xff]  ;;  %v135_v28 = vld [vmem:[%s679_s3 + $0x1a0] sm:$0xff]  ;;  %v136_v29 = vld [vmem:[%s679_s3 + $0x1a8] sm:$0xff] }
   0xb   :  { %175 = vmatpush.msra.mxu3 %v141_v16  ;;  %215 = vmatpush.msrb.mxu1 %v142_v17  ;;  %v102_v30 = vld [vmem:[%s679_s3 + $0x98] sm:$0xff]  ;;  %v99_v31 = vld [vmem:[%s679_s3 + $0x80] sm:$0xff]  ;;  %v133_v32 = vld [vmem:[%s679_s3 + $0x190] sm:$0xff] }
   0xc   :  { %196 = vmatpush.msrb.mxu0 %v108_v18  ;;  %157 = vmatpush.msra.mxu2 %v105_v19  ;;  %v134_v33 = vld [vmem:[%s679_s3 + $0x198] sm:$0xff]  ;;  %v100_v34 = vld [vmem:[%s679_s3 + $0x88] sm:$0xff]  ;;  %v97_v35 = vld [vmem:[%s679_s3 + $0x70] sm:$0xff] }
   0xd   :  { %176 = vmatpush.msra.mxu3 %v139_v20  ;;  %216 = vmatpush.msrb.mxu1 %v140_v21  ;;  %v131_v36 = vld [vmem:[%s679_s3 + $0x180] sm:$0xff]  ;;  %v132_v37 = vld [vmem:[%s679_s3 + $0x188] sm:$0xff]  ;;  %v98_v38 = vld [vmem:[%s679_s3 + $0x78] sm:$0xff] }
   0xe   :  { %197 = vmatpush.msrb.mxu0 %v106_v22  ;;  %158 = vmatpush.msra.mxu2 %v103_v23  ;;  %v95_v39 = vld [vmem:[%s679_s3 + $0x60] sm:$0xff]  ;;  %v129_v40 = vld [vmem:[%s679_s3 + $0x170] sm:$0xff]  ;;  %v130_v41 = vld [vmem:[%s679_s3 + $0x178] sm:$0xff] }
   0xf   :  { %177 = vmatpush.msra.mxu3 %v137_v24  ;;  %217 = vmatpush.msrb.mxu1 %v138_v25  ;;  %v96_v42 = vld [vmem:[%s679_s3 + $0x68] sm:$0xff]  ;;  %v93_v43 = vld [vmem:[%s679_s3 + $0x50] sm:$0xff]  ;;  %v127_v44 = vld [vmem:[%s679_s3 + $0x160] sm:$0xff] }
  0x10   :  { %198 = vmatpush.msrb.mxu0 %v104_v26  ;;  %159 = vmatpush.msra.mxu2 %v101_v27  ;;  %v128_v45 = vld [vmem:[%s679_s3 + $0x168] sm:$0xff]  ;;  %v94_v46 = vld [vmem:[%s679_s3 + $0x58] sm:$0xff]  ;;  %v91_v47 = vld [vmem:[%s679_s3 + $0x40] sm:$0xff] }
  0x11   :  { %178 = vmatpush.msra.mxu3 %v135_v28  ;;  %218 = vmatpush.msrb.mxu1 %v136_v29  ;;  %v125_v48 = vld [vmem:[%s679_s3 + $0x150] sm:$0xff]  ;;  %v126_v49 = vld [vmem:[%s679_s3 + $0x158] sm:$0xff]  ;;  %v92_v50 = vld [vmem:[%s679_s3 + $0x48] sm:$0xff] }
  0x12   :  { %199 = vmatpush.msrb.mxu0 %v102_v30  ;;  %160 = vmatpush.msra.mxu2 %v99_v31  ;;  %v89_v51 = vld [vmem:[%s679_s3 + $0x30] sm:$0xff]  ;;  %v123_v52 = vld [vmem:[%s679_s3 + $0x140] sm:$0xff]  ;;  %v124_v53 = vld [vmem:[%s679_s3 + $0x148] sm:$0xff] }
  0x13   :  { %179 = vmatpush.msra.mxu3 %v133_v32  ;;  %219 = vmatpush.msrb.mxu1 %v134_v33  ;;  %v90_v54 = vld [vmem:[%s679_s3 + $0x38] sm:$0xff]  ;;  %v87_v55 = vld [vmem:[%s679_s3 + $0x20] sm:$0xff]  ;;  %v121_v56 = vld [vmem:[%s679_s3 + $0x130] sm:$0xff] }
  0x14   :  { %200 = vmatpush.msrb.mxu0 %v100_v34  ;;  %161 = vmatpush.msra.mxu2 %v97_v35  ;;  %v88_v57 = vld [vmem:[%s679_s3 + $0x28] sm:$0xff]  ;;  %v122_v58 = vld [vmem:[%s679_s3 + $0x138] sm:$0xff]  ;;  %v85_v59 = vld [vmem:[%s679_s3 + $0x10] sm:$0xff] }
  0x15   :  { %180 = vmatpush.msra.mxu3 %v131_v36  ;;  %220 = vmatpush.msrb.mxu1 %v132_v37  ;;  %v119_v60 = vld [vmem:[%s679_s3 + $0x120] sm:$0xff]  ;;  %v86_v61 = vld [vmem:[%s679_s3 + $0x18] sm:$0xff]  ;;  %v120_v62 = vld [vmem:[%s679_s3 + $0x128] sm:$0xff] }
  0x16   :  { %201 = vmatpush.msrb.mxu0 %v98_v38  ;;  %162 = vmatpush.msra.mxu2 %v95_v39  ;;  %v83_v63 = vld [vmem:[%s679_s3] sm:$0xff]  ;;  %v117_v0 = vld [vmem:[%s679_s3 + $0x110] sm:$0xff]  ;;  %v84_v1 = vld [vmem:[%s679_s3 + $0x8] sm:$0xff] }
  0x17   :  { %181 = vmatpush.msra.mxu3 %v129_v40  ;;  %221 = vmatpush.msrb.mxu1 %v130_v41  ;;  %v118_v2 = vld [vmem:[%s679_s3 + $0x118] sm:$0xff]  ;;  %v115_v3 = vld [vmem:[%s679_s3 + $0x100] sm:$0xff]  ;;  %v116_v4 = vld [vmem:[%s679_s3 + $0x108] sm:$0xff] }
  0x18   :  { %202 = vmatpush.msrb.mxu0 %v96_v42  ;;  %163 = vmatpush.msra.mxu2 %v93_v43  ;;  %v266_v5 = vld [vmem:[%s680_s5 + $0xf8] sm:$0xff]  ;;  %v265_v6 = vld [vmem:[%s680_s5 + $0xf0] sm:$0xff]  ;;  %v264_v9 = vld [vmem:[%s680_s5 + $0xe8] sm:$0xff] }
  0x19   :  { %182 = vmatpush.msra.mxu3 %v127_v44  ;;  %222 = vmatpush.msrb.mxu1 %v128_v45  ;;  %v250_v7 = vld [vmem:[%s680_s5 + $0x78] sm:$0xff]  ;;  %v249_v8 = vld [vmem:[%s680_s5 + $0x70] sm:$0xff]  ;;  %v248_v10 = vld [vmem:[%s680_s5 + $0x68] sm:$0xff] }
  0x1a   :  { %203 = vmatpush.msrb.mxu0 %v94_v46  ;;  %164 = vmatpush.msra.mxu2 %v91_v47  ;;  %v263_v11 = vld [vmem:[%s680_s5 + $0xe0] sm:$0xff]  ;;  %v262_v13 = vld [vmem:[%s680_s5 + $0xd8] sm:$0xff]  ;;  %v261_v15 = vld [vmem:[%s680_s5 + $0xd0] sm:$0xff] }
  0x1b   :  { %183 = vmatpush.msra.mxu3 %v125_v48  ;;  %223 = vmatpush.msrb.mxu1 %v126_v49  ;;  %v247_v12 = vld [vmem:[%s680_s5 + $0x60] sm:$0xff]  ;;  %v246_v14 = vld [vmem:[%s680_s5 + $0x58] sm:$0xff]  ;;  %v245_v16 = vld [vmem:[%s680_s5 + $0x50] sm:$0xff] }
  0x1c   :  { %204 = vmatpush.msrb.mxu0 %v92_v50  ;;  %165 = vmatpush.msra.mxu2 %v89_v51  ;;  %v260_v17 = vld [vmem:[%s680_s5 + $0xc8] sm:$0xff]  ;;  %v259_v19 = vld [vmem:[%s680_s5 + $0xc0] sm:$0xff]  ;;  %v258_v21 = vld [vmem:[%s680_s5 + $0xb8] sm:$0xff] }
  0x1d   :  { %184 = vmatpush.msra.mxu3 %v123_v52  ;;  %224 = vmatpush.msrb.mxu1 %v124_v53  ;;  %v244_v18 = vld [vmem:[%s680_s5 + $0x48] sm:$0xff]  ;;  %v243_v20 = vld [vmem:[%s680_s5 + $0x40] sm:$0xff]  ;;  %v242_v22 = vld [vmem:[%s680_s5 + $0x38] sm:$0xff] }
  0x1e   :  { %205 = vmatpush.msrb.mxu0 %v90_v54  ;;  %166 = vmatpush.msra.mxu2 %v87_v55  ;;  %v257_v23 = vld [vmem:[%s680_s5 + $0xb0] sm:$0xff]  ;;  %v256_v24 = vld [vmem:[%s680_s5 + $0xa8] sm:$0xff]  ;;  %v31_v25 = vld [vmem:[%s681_s2] sm:$0x3] }
  0x1f   :  { %185 = vmatpush.msra.mxu3 %v121_v56  ;;  %225 = vmatpush.msrb.mxu1 %v122_v58  ;;  %v255_v26 = vld [vmem:[%s680_s5 + $0xa0] sm:$0xff]  ;;  %v33_v27 = vperm.slane %v31_v25, 0  ;;  %v34_v28 = vperm.slane %v31_v25, 1  ;;  %v241_v35 = vld [vmem:[%s680_s5 + $0x30] sm:$0xff]  ;;  %v254_v36 = vld [vmem:[%s680_s5 + $0x98] sm:$0xff] }
  0x20   :  { %206 = vmatpush.msrb.mxu0 %v88_v57  ;;  %167 = vmatpush.msra.mxu2 %v85_v59  ;;  %v240_v37 = vld [vmem:[%s680_s5 + $0x28] sm:$0xff]  ;;  %v253_v38 = vld [vmem:[%s680_s5 + $0x90] sm:$0xff]  ;;  %v239_v39 = vld [vmem:[%s680_s5 + $0x20] sm:$0xff] }
  0x21   :  { %186 = vmatpush.msra.mxu3 %v119_v60  ;;  %226 = vmatpush.msrb.mxu1 %v120_v62  ;;  %v252_v40 = vld [vmem:[%s680_s5 + $0x88] sm:$0xff]  ;;  %v238_v41 = vld [vmem:[%s680_s5 + $0x18] sm:$0xff]  ;;  %v251_v42 = vld [vmem:[%s680_s5 + $0x80] sm:$0xff] }
  0x22   :  { %207 = vmatpush.msrb.mxu0 %v86_v61  ;;  %168 = vmatpush.msra.mxu2 %v83_v63  ;;  %v237_v43 = vld [vmem:[%s680_s5 + $0x10] sm:$0xff]  ;;  %v236_v44 = vld [vmem:[%s680_s5 + $0x8] sm:$0xff]  ;;  %v235_v45 = vld [vmem:[%s680_s5] sm:$0xff] }
  0x23   :  { %187 = vmatpush.msra.mxu3 %v117_v0  ;;  %227 = vmatpush.msrb.mxu1 %v118_v2  ;;  %v147_v46 = vld [vmem:[%s682_s4] sm:$0x3] }
  0x24   :  { %208 = vmatpush.msrb.mxu0 %v84_v1  ;;  %271 = vmatpush.msrb.mxu2 %v250_v7  ;;  %v150_v47 = vperm.slane %v147_v46, 1  ;;  %v149_v52 = vperm.slane %v147_v46, 0  ;;  %v319_v59 = vld [vmem:[%s683_s6] ss:$0 sm:$0xff] }
  0x25   :  { %188 = vmatpush.msra.mxu3 %v115_v3  ;;  %228 = vmatpush.msrb.mxu1 %v116_v4 }
  0x26   :  { %272 = vmatpush.msrb.mxu2 %v249_v8 }
  0x27   :  { %291 = vmatpush.msrb.mxu3 %v266_v5 }
  0x28   :  { %273 = vmatpush.msrb.mxu2 %v248_v10 }
  0x29   :  { %292 = vmatpush.msrb.mxu3 %v265_v6 }
  0x2a   :  { %274 = vmatpush.msrb.mxu2 %v247_v12 }
  0x2b   :  { %293 = vmatpush.msrb.mxu3 %v264_v9 }
  0x2c   :  { %275 = vmatpush.msrb.mxu2 %v246_v14 }
  0x2d   :  { %294 = vmatpush.msrb.mxu3 %v263_v11 }
  0x2e   :  { %276 = vmatpush.msrb.mxu2 %v245_v16 }
  0x2f   :  { %295 = vmatpush.msrb.mxu3 %v262_v13 }
  0x30   :  { %277 = vmatpush.msrb.mxu2 %v244_v18 }
  0x31   :  { %296 = vmatpush.msrb.mxu3 %v261_v15 }
  0x32   :  { %278 = vmatpush.msrb.mxu2 %v243_v20 }
  0x33   :  { %297 = vmatpush.msrb.mxu3 %v260_v17 }
  0x34   :  { %279 = vmatpush.msrb.mxu2 %v242_v22 }
  0x35   :  { %298 = vmatpush.msrb.mxu3 %v259_v19 }
  0x36   :  { %280 = vmatpush.msrb.mxu2 %v241_v35 }
  0x37   :  { %299 = vmatpush.msrb.mxu3 %v258_v21 }
  0x38   :  { %281 = vmatpush.msrb.mxu2 %v240_v37 }
  0x39   :  { %300 = vmatpush.msrb.mxu3 %v257_v23 }
  0x3a   :  { %282 = vmatpush.msrb.mxu2 %v239_v39 }
  0x3b   :  { %301 = vmatpush.msrb.mxu3 %v256_v24 }
  0x3c   :  { %283 = vmatpush.msrb.mxu2 %v238_v41 }
  0x3d   :  { %302 = vmatpush.msrb.mxu3 %v255_v26 }
  0x3e   :  { %284 = vmatpush.msrb.mxu2 %v237_v43 }
  0x3f   :  { %303 = vmatpush.msrb.mxu3 %v254_v36 }
  0x40   :  { %285 = vmatpush.msrb.mxu2 %v236_v44 }
  0x41   :  { %304 = vmatpush.msrb.mxu3 %v253_v38 }
  0x42   :  { %286 = vmatpush.msrb.mxu2 %v235_v45 }
  0x43   :  { %305 = vmatpush.msrb.mxu3 %v252_v40 }
  0x45   :  { %306 = vmatpush.msrb.mxu3 %v251_v42 }
  0x82   :  { %v58_v29 = vpop.f32.mrf.mxu0  ;;  %v78_v30 = vpop.f32.mrf.mxu1 }
  0x83   :  { %v59_v31 = vadd.f32 %v58_v29, %v33_v27  ;;  %v79_v32 = vadd.f32 %v78_v30, %v34_v28 }
  0x85   :  { %v81_v33 = vmax.f32 %v59_v31, 0.0  ;;  %v82_v34 = vmax.f32 %v79_v32, 0.0 }
  0x87   :  { %169 = vmatmul.f32.vlgmr.msra.gmra.mxu2 %v81_v33  ;;  %209 = vmatmul.f32.vlgmr.msrb.gmra.mxu0 %v81_v33 }
  0x88   :  { %189 = vmatmul.f32.vlgmr.msra.gmra.mxu3 %v82_v34  ;;  %229 = vmatmul.f32.vlgmr.msrb.gmra.mxu1 %v82_v34 }
 0x104   :  { %v210_v48 = vpop.f32.mrf.mxu0 }
 0x105   :  { %v211_v49 = vadd.f32 %v210_v48, %v150_v47  ;;  %v230_v50 = vpop.f32.mrf.mxu1 }
 0x107   :  { %v231_v51 = vadd.f32 %v230_v50, %v211_v49 }
 0x109   :  { %v234_v53 = vmax.f32 %v231_v51, 0.0 }
 0x10a   :  { %v170_v54 = vpop.f32.mrf.mxu2 }
 0x10b   :  { %v171_v55 = vadd.f32 %v170_v54, %v149_v52  ;;  %307 = vmatmul.f32.vlgmr.msrb.gmra.mxu3 %v234_v53  ;;  %v190_v56 = vpop.f32.mrf.mxu3 }
 0x10d   :  { %v191_v57 = vadd.f32 %v190_v56, %v171_v55 }
 0x10f   :  { %v233_v58 = vmax.f32 %v191_v57, 0.0 }
 0x111   :  { %287 = vmatmul.f32.vlgmr.msrb.gmra.mxu2 %v233_v58 }
 0x18e   :  { %v308_v62 = vpop.f32.mrf.mxu3 }
 0x194   :  { %v288_v60 = vpop.f32.mrf.mxu2 }
 0x195   :  { %v289_v61 = vadd.f32 %v319_v59, %v288_v60 }
 0x197   :  { %v309_v63 = vadd.f32 %v308_v62, %v289_v61 }
 0x199   :  { %320 = vtanh.f32 %v309_v63 }
 0x19f   :  { %v321_v0 = vpop.eup %320 }
 0x1a0   :  { %312 = vst [vmem:[%s684_s7] sm:$0xff] %v321_v0 }

</bundles_post_ra>
